<compile_context>
chip_gen: v7x
topology: tpu7x:2x2x1
jax: 0.10.0
libtpu: 0.0.40
codegen_flags: <defaults>
</compile_context>

<pallas_src>
import jax
import jax.numpy as jnp
from jax.experimental import pallas as pl
from jax.experimental.pallas import tpu as pltpu

# ----------------------------- configuration ------------------------------
EMBED_DIM = 64                 # embed_dim (small, per instructions)
INCLUDE_OPA = True
DIM_FEATURE = 3
OUTPUT_DIM = 5 + int(INCLUDE_OPA) + DIM_FEATURE   # = 9
REFINE_STATE = tuple(range(6))                    # must satisfy refine_state[i] == i
NUM_REFINE = len(REFINE_STATE)
LN_EPS = 1e-5                  # torch.nn.LayerNorm default

# The in-kernel iota mask assumes refine_state is exactly range(k) (same
# assumption the PyTorch module asserts in __init__).
assert all(REFINE_STATE[i] == i for i in range(NUM_REFINE)), \
    "kernel refine mask requires refine_state == range(len(refine_state))"


def _round_up(x, m):
    return ((x + m - 1) // m) * m


# ------------------------------ Pallas kernel -----------------------------
def _refine_kernel(
    inst_ref, emb_ref, anchor_ref,
    w1_ref, w2_ref, w3_ref, w4_ref, w5_ref,
    vecs_ref,            # packed (8, D): b1, b2, g1, be1, b3, b4, g2, be2
    b5_ref,              # (1, O) head bias with Scale() already folded in
    out_ref,
):
    def _layernorm(h, g, b):
        mu = jnp.mean(h, axis=-1, keepdims=True)
        d = h - mu
        var = jnp.mean(d * d, axis=-1, keepdims=True)
        return d * jax.lax.rsqrt(var + LN_EPS) * g + b

    def _dense(h, w_ref, bias):
        # bf16 operands feed the MXU; accumulation and bias add stay in f32.
        return jnp.dot(h.astype(w_ref.dtype), w_ref[...],
                       preferred_element_type=jnp.float32) + bias

    b1 = vecs_ref[0:1, :]
    b2 = vecs_ref[1:2, :]
    g1 = vecs_ref[2:3, :]
    be1 = vecs_ref[3:4, :]
    b3 = vecs_ref[4:5, :]
    b4 = vecs_ref[5:6, :]
    g2 = vecs_ref[6:7, :]
    be2 = vecs_ref[7:8, :]

    # Inputs may arrive as f32 or bf16; promote in-register (no wrapper pass).
    x = inst_ref[...].astype(jnp.float32) + emb_ref[...].astype(jnp.float32)

    # block 1: (Linear+ReLU) x2 + LayerNorm
    h = jnp.maximum(_dense(x, w1_ref, b1), 0.0)
    h = jnp.maximum(_dense(h, w2_ref, b2), 0.0)
    h = _layernorm(h, g1, be1)

    # block 2: (Linear+ReLU) x2 + LayerNorm
    h = jnp.maximum(_dense(h, w3_ref, b3), 0.0)
    h = jnp.maximum(_dense(h, w4_ref, b4), 0.0)
    h = _layernorm(h, g2, be2)

    # head: Linear(D, O) with Scale() pre-folded into w5 / b5
    out = _dense(h, w5_ref, b5_ref[...])                              # [tm, O] f32

    # refine_state add: output[..., :k] += anchor[..., :k]; tail unchanged.
    o = out.shape[-1]
    lane = jax.lax.broadcasted_iota(jnp.int32, (1, o), 1)
    out_ref[...] = out + jnp.where(
        lane < NUM_REFINE, anchor_ref[...].astype(jnp.float32), 0.0)


# --------------------- one-time parameter preparation ----------------------
def prepare_params(params):
    """Fold Scale() into the head, cast matmul weights to bf16, pack the
    eight (1, D) bias/LayerNorm vectors into a single (8, D) operand.

    Call ONCE (outside the per-step forward path)."""
    wdt = jnp.bfloat16
    return {
        "w1": params["w1"].astype(wdt),
        "w2": params["w2"].astype(wdt),
        "w3": params["w3"].astype(wdt),
        "w4": params["w4"].astype(wdt),
        "w5": (params["w5"] * params["scale"]).astype(wdt),
        "b5": (params["b5"] * params["scale"]).astype(jnp.float32),   # (1, O)
        "vecs": jnp.concatenate(
            [params["b1"], params["b2"], params["g1"], params["be1"],
             params["b3"], params["b4"], params["g2"], params["be2"]],
            axis=0).astype(jnp.float32),                              # (8, D)
    }


# ------------------------------ Python wrapper -----------------------------
def gaussian_refine_forward(instance_feature, anchor_embed, anchor, prepared,
                            *, row_tile=1024):
    """Runs GaussianRefinementModule.forward as one fused Pallas kernel.

    instance_feature, anchor_embed : [B, N, D] float32 or bfloat16
    anchor                         : [B, N, O] (only first k channels used)
    prepared                       : output of prepare_params()
    """
    B, N, D = instance_feature.shape
    O = anchor.shape[-1]
    M = B * N

    # Tile selection:
    #   * big tiles (default 1024 rows) amortize the ~0.35 us/step grid
    #     overhead; per-step VMEM is tiny on v5e/v6e/v7x.
    #   * cap so the grid has >= 2 steps whenever M allows it, so the
    #     "parallel" axis can shard across v7x's 2 TensorCores.
    row_tile = max(8, min(row_tile, _round_up(pl.cdiv(M, 2), 8)))
    grid = (pl.cdiv(M, row_tile),)

    # No jnp.pad / output slice: Pallas write-masks the OOB rows of the last
    # ragged block, and all ops are row-independent (LayerNorm reduces over
    # lanes only), so garbage rows cannot contaminate valid ones.
    inst2d = instance_feature.reshape(M, D)
    emb2d = anchor_embed.reshape(M, D)
    anch2d = anchor.reshape(M, O)

    row_spec_D = pl.BlockSpec((row_tile, D), lambda i: (i, 0))
    row_spec_O = pl.BlockSpec((row_tile, O), lambda i: (i, 0))

    def full(shape):
        return pl.BlockSpec(shape, lambda i, _s=len(shape): (0,) * _s)

    grid_spec = pltpu.PrefetchScalarGridSpec(
        num_scalar_prefetch=0,
        grid=grid,
        in_specs=[
            row_spec_D,            # instance_feature
            row_spec_D,            # anchor_embed
            row_spec_O,            # anchor
            full((D, D)),          # w1
            full((D, D)),          # w2
            full((D, D)),          # w3
            full((D, D)),          # w4
            full((D, O)),          # w5 (scale folded)
            full((8, D)),          # packed bias / LN vectors
            full((1, O)),          # b5 (scale folded)
        ],
        out_specs=row_spec_O,
    )

    act_bytes = jnp.dtype(instance_feature.dtype).itemsize
    flops = 2 * M * (4 * D * D + D * O)
    bytes_accessed = (M * (2 * D * act_bytes + 2 * O * 4)   # activations in/out
                      + (4 * D * D + D * O) * 2             # bf16 weights
                      + (8 * D + O) * 4)                    # f32 vectors
    cost = pl.CostEstimate(flops=flops, transcendentals=0,
                           bytes_accessed=bytes_accessed)

    out2d = pl.pallas_call(
        _refine_kernel,
        out_shape=jax.ShapeDtypeStruct((M, O), jnp.float32),
        grid_spec=grid_spec,
        compiler_params=pltpu.CompilerParams(
            dimension_semantics=("parallel",)),
        cost_estimate=cost,
    )(inst2d, emb2d, anch2d,
      prepared["w1"], prepared["w2"], prepared["w3"], prepared["w4"],
      prepared["w5"], prepared["vecs"], prepared["b5"])

    return out2d.reshape(B, N, O)


# ------------------------- deterministic param init ------------------------
def init_params(key, D, O):
    ks = jax.random.split(key, 16)
    std = 0.05
    return {
        "w1": jax.random.normal(ks[0], (D, D), jnp.float32) * std,
        "b1": jax.random.normal(ks[1], (1, D), jnp.float32) * std,
        "w2": jax.random.normal(ks[2], (D, D), jnp.float32) * std,
        "b2": jax.random.normal(ks[3], (1, D), jnp.float32) * std,
        "g1": jnp.ones((1, D), jnp.float32),      # LayerNorm weight init = 1
        "be1": jnp.zeros((1, D), jnp.float32),    # LayerNorm bias init = 0
        "w3": jax.random.normal(ks[4], (D, D), jnp.float32) * std,
        "b3": jax.random.normal(ks[5], (1, D), jnp.float32) * std,
        "w4": jax.random.normal(ks[6], (D, D), jnp.float32) * std,
        "b4": jax.random.normal(ks[7], (1, D), jnp.float32) * std,
        "g2": jnp.ones((1, D), jnp.float32),
        "be2": jnp.zeros((1, D), jnp.float32),
        "w5": jax.random.normal(ks[8], (D, O), jnp.float32) * std,
        "b5": jax.random.normal(ks[9], (1, O), jnp.float32) * std,
        "scale": jnp.ones((1, O), jnp.float32),   # Scale([1.0] * output_dim)
    }


# ------------------------------- pure-JAX ref -------------------------------
def _reference(inst, emb, anchor, p):
    def ln(h, g, b):
        mu = h.mean(-1, keepdims=True)
        var = ((h - mu) ** 2).mean(-1, keepdims=True)
        return (h - mu) / jnp.sqrt(var + LN_EPS) * g + b

    x = inst.astype(jnp.float32) + emb.astype(jnp.float32)
    h = jnp.maximum(x @ p["w1"] + p["b1"], 0.0)
    h = jnp.maximum(h @ p["w2"] + p["b2"], 0.0)
    h = ln(h, p["g1"], p["be1"])
    h = jnp.maximum(h @ p["w3"] + p["b3"], 0.0)
    h = jnp.maximum(h @ p["w4"] + p["b4"], 0.0)
    h = ln(h, p["g2"], p["be2"])
    out = (h @ p["w5"] + p["b5"]) * p["scale"]
    k = NUM_REFINE
    refined = out[..., :k] + anchor[..., :k].astype(jnp.float32)
    return jnp.concatenate([refined, out[..., k:]], axis=-1)


# ----------------------------------- main -----------------------------------
if __name__ == "__main__":
    D, O = EMBED_DIM, OUTPUT_DIM
    key = jax.random.PRNGKey(0)
    k_inst, k_emb, k_anch, k_par = jax.random.split(key, 4)
    params = init_params(k_par, D, O)
    prepared = prepare_params(params)   # one-time prep, outside the call path

    # bf16 matmul operands -> compare against the f32 reference with a loose
    # tolerance (error is dominated by bf16 rounding, well under 5e-2 here).
    ATOL = RTOL = 5e-2

    # Case 1: small shapes (tile shrinks to 8 rows, 2-step grid).
    B, N = 2, 8
    instance_feature = jax.random.normal(k_inst, (B, N, D), jnp.float32)
    anchor_embed = jax.random.normal(k_emb, (B, N, D), jnp.float32)
    anchor = jax.random.normal(k_anch, (B, N, O), jnp.float32)

    out = gaussian_refine_forward(instance_feature, anchor_embed, anchor, prepared)
    out = jax.block_until_ready(out)
    ref = _reference(instance_feature, anchor_embed, anchor, params)
    assert out.shape == (B, N, O)
    assert jnp.allclose(out, ref, atol=ATOL, rtol=RTOL), "mismatch (small case)"

    # Case 2: M not a multiple of the row tile -> ragged last block,
    # no wrapper-side pad/slice, write-masked OOB rows.
    B2, N2 = 3, 100
    inst2 = jax.random.normal(jax.random.PRNGKey(1), (B2, N2, D), jnp.float32)
    emb2 = jax.random.normal(jax.random.PRNGKey(2), (B2, N2, D), jnp.float32)
    anch2 = jax.random.normal(jax.random.PRNGKey(3), (B2, N2, O), jnp.float32)

    out2 = gaussian_refine_forward(inst2, emb2, anch2, prepared)
    out2 = jax.block_until_ready(out2)
    ref2 = _reference(inst2, emb2, anch2, params)
    assert out2.shape == (B2, N2, O)
    assert jnp.allclose(out2, ref2, atol=ATOL, rtol=RTOL), "mismatch (ragged case)"

    # Case 3: bf16 activations (halves input HBM traffic for bf16 pipelines).
    inst3 = inst2.astype(jnp.bfloat16)
    emb3 = emb2.astype(jnp.bfloat16)
    out3 = gaussian_refine_forward(inst3, emb3, anch2, prepared)
    out3 = jax.block_until_ready(out3)
    ref3 = _reference(inst3, emb3, anch2, params)   # ref on bf16-rounded inputs
    assert out3.shape == (B2, N2, O)
    assert jnp.allclose(out3, ref3, atol=ATOL, rtol=RTOL), "mismatch (bf16 case)"

    # TODO(synk): get_gaussian() (safe_sigmoid ranges, to_features head, and the
    # RangeScheduler EMA state update) is stateful host-side logic outside the
    # forward() kernel and is not implemented here.
    print("KERNEL_OK")
</pallas_src>

<mosaic_0001>
module attributes {stable_mosaic.version = 11 : i64} {
  func.func @_refine_kernel(%arg0: i32, %arg1: memref<8x64xf32, #tpu.memory_space<vmem>>, %arg2: memref<8x64xf32, #tpu.memory_space<vmem>>, %arg3: memref<8x9xf32, #tpu.memory_space<vmem>>, %arg4: memref<64x64xbf16, #tpu.memory_space<vmem>>, %arg5: memref<64x64xbf16, #tpu.memory_space<vmem>>, %arg6: memref<64x64xbf16, #tpu.memory_space<vmem>>, %arg7: memref<64x64xbf16, #tpu.memory_space<vmem>>, %arg8: memref<64x9xbf16, #tpu.memory_space<vmem>>, %arg9: memref<8x64xf32, #tpu.memory_space<vmem>>, %arg10: memref<1x9xf32, #tpu.memory_space<vmem>>, %arg11: memref<8x9xf32, #tpu.memory_space<vmem>>) attributes {dimension_semantics = [#tpu.dimension_semantics<parallel>], iteration_bounds = array<i64: 2>, scalar_prefetch = 0 : i64, scratch_operands = 0 : i64, tpu.core_type = #tpu.core_type<tc>, window_params = [{transform_indices = @transform_0, window_bounds = array<i64: 8, 64>}, {transform_indices = @transform_1, window_bounds = array<i64: 8, 64>}, {transform_indices = @transform_2, window_bounds = array<i64: 8, 9>}, {pipeline_mode = #tpu.pipeline_mode<synchronous>, transform_indices = @transform_3, window_bounds = array<i64: 64, 64>}, {pipeline_mode = #tpu.pipeline_mode<synchronous>, transform_indices = @transform_4, window_bounds = array<i64: 64, 64>}, {pipeline_mode = #tpu.pipeline_mode<synchronous>, transform_indices = @transform_5, window_bounds = array<i64: 64, 64>}, {pipeline_mode = #tpu.pipeline_mode<synchronous>, transform_indices = @transform_6, window_bounds = array<i64: 64, 64>}, {pipeline_mode = #tpu.pipeline_mode<synchronous>, transform_indices = @transform_7, window_bounds = array<i64: 64, 9>}, {pipeline_mode = #tpu.pipeline_mode<synchronous>, transform_indices = @transform_8, window_bounds = array<i64: 8, 64>}, {pipeline_mode = #tpu.pipeline_mode<synchronous>, transform_indices = @transform_9, window_bounds = array<i64: 1, 9>}, {transform_indices = @transform_10, window_bounds = array<i64: 8, 9>}]} {
    %c0 = arith.constant 0 : index
    %c0_0 = arith.constant 0 : index
    %0 = vector.load %arg9[%c0, %c0_0] : memref<8x64xf32, #tpu.memory_space<vmem>>, vector<1x64xf32>
    %c1 = arith.constant 1 : index
    %c0_1 = arith.constant 0 : index
    %1 = vector.load %arg9[%c1, %c0_1] : memref<8x64xf32, #tpu.memory_space<vmem>>, vector<1x64xf32>
    %c2 = arith.constant 2 : index
    %c0_2 = arith.constant 0 : index
    %2 = vector.load %arg9[%c2, %c0_2] : memref<8x64xf32, #tpu.memory_space<vmem>>, vector<1x64xf32>
    %c3 = arith.constant 3 : index
    %c0_3 = arith.constant 0 : index
    %3 = vector.load %arg9[%c3, %c0_3] : memref<8x64xf32, #tpu.memory_space<vmem>>, vector<1x64xf32>
    %c4 = arith.constant 4 : index
    %c0_4 = arith.constant 0 : index
    %4 = vector.load %arg9[%c4, %c0_4] : memref<8x64xf32, #tpu.memory_space<vmem>>, vector<1x64xf32>
    %c5 = arith.constant 5 : index
    %c0_5 = arith.constant 0 : index
    %5 = vector.load %arg9[%c5, %c0_5] : memref<8x64xf32, #tpu.memory_space<vmem>>, vector<1x64xf32>
    %c6 = arith.constant 6 : index
    %c0_6 = arith.constant 0 : index
    %6 = vector.load %arg9[%c6, %c0_6] : memref<8x64xf32, #tpu.memory_space<vmem>>, vector<1x64xf32>
    %c7 = arith.constant 7 : index
    %c0_7 = arith.constant 0 : index
    %7 = vector.load %arg9[%c7, %c0_7] : memref<8x64xf32, #tpu.memory_space<vmem>>, vector<1x64xf32>
    %c0_8 = arith.constant 0 : index
    %c0_9 = arith.constant 0 : index
    %8 = vector.load %arg1[%c0_8, %c0_9] : memref<8x64xf32, #tpu.memory_space<vmem>>, vector<8x64xf32>
    %c0_10 = arith.constant 0 : index
    %c0_11 = arith.constant 0 : index
    %9 = vector.load %arg2[%c0_10, %c0_11] : memref<8x64xf32, #tpu.memory_space<vmem>>, vector<8x64xf32>
    %10 = arith.addf %8, %9 : vector<8x64xf32>
    %11 = arith.truncf %10 : vector<8x64xf32> to vector<8x64xbf16>
    %c0_12 = arith.constant 0 : index
    %c0_13 = arith.constant 0 : index
    %12 = vector.load %arg4[%c0_12, %c0_13] : memref<64x64xbf16, #tpu.memory_space<vmem>>, vector<64x64xbf16>
    %cst = arith.constant dense<0.000000e+00> : vector<8x64xf32>
    %13 = tpu.matmul %11, %12, %cst {dimension_numbers = #tpu.dot_dimension_numbers<[1], [0], [0], [1], [0, 0, 1, 1], [], []>} : vector<8x64xbf16>, vector<64x64xbf16>, vector<8x64xf32> -> vector<8x64xf32>
    %14 = vector.broadcast %0 : vector<1x64xf32> to vector<8x64xf32>
    %15 = arith.addf %13, %14 : vector<8x64xf32>
    %cst_14 = arith.constant 0.000000e+00 : f32
    %16 = vector.broadcast %cst_14 : f32 to vector<8x64xf32>
    %17 = arith.maximumf %15, %16 : vector<8x64xf32>
    %18 = arith.truncf %17 : vector<8x64xf32> to vector<8x64xbf16>
    %c0_15 = arith.constant 0 : index
    %c0_16 = arith.constant 0 : index
    %19 = vector.load %arg5[%c0_15, %c0_16] : memref<64x64xbf16, #tpu.memory_space<vmem>>, vector<64x64xbf16>
    %cst_17 = arith.constant dense<0.000000e+00> : vector<8x64xf32>
    %20 = tpu.matmul %18, %19, %cst_17 {dimension_numbers = #tpu.dot_dimension_numbers<[1], [0], [0], [1], [0, 0, 1, 1], [], []>} : vector<8x64xbf16>, vector<64x64xbf16>, vector<8x64xf32> -> vector<8x64xf32>
    %21 = vector.broadcast %1 : vector<1x64xf32> to vector<8x64xf32>
    %22 = arith.addf %20, %21 : vector<8x64xf32>
    %cst_18 = arith.constant 0.000000e+00 : f32
    %23 = vector.broadcast %cst_18 : f32 to vector<8x64xf32>
    %24 = arith.maximumf %22, %23 : vector<8x64xf32>
    %cst_19 = arith.constant dense<0.000000e+00> : vector<8xf32>
    %25 = vector.multi_reduction <add>, %24, %cst_19 [1] : vector<8x64xf32> to vector<8xf32>
    %26 = vector.shape_cast %25 : vector<8xf32> to vector<8x1xf32>
    %cst_20 = arith.constant 6.400000e+01 : f32
    %27 = vector.broadcast %cst_20 : f32 to vector<8x1xf32>
    %28 = arith.divf %26, %27 : vector<8x1xf32>
    %29 = vector.broadcast %28 : vector<8x1xf32> to vector<8x64xf32>
    %30 = arith.subf %24, %29 : vector<8x64xf32>
    %31 = arith.mulf %30, %30 : vector<8x64xf32>
    %cst_21 = arith.constant dense<0.000000e+00> : vector<8xf32>
    %32 = vector.multi_reduction <add>, %31, %cst_21 [1] : vector<8x64xf32> to vector<8xf32>
    %33 = vector.shape_cast %32 : vector<8xf32> to vector<8x1xf32>
    %cst_22 = arith.constant 6.400000e+01 : f32
    %34 = vector.broadcast %cst_22 : f32 to vector<8x1xf32>
    %35 = arith.divf %33, %34 : vector<8x1xf32>
    %cst_23 = arith.constant 9.99999974E-6 : f32
    %36 = vector.broadcast %cst_23 : f32 to vector<8x1xf32>
    %37 = arith.addf %35, %36 : vector<8x1xf32>
    %38 = math.rsqrt %37 : vector<8x1xf32>
    %39 = vector.broadcast %38 : vector<8x1xf32> to vector<8x64xf32>
    %40 = arith.mulf %30, %39 : vector<8x64xf32>
    %41 = vector.broadcast %2 : vector<1x64xf32> to vector<8x64xf32>
    %42 = arith.mulf %40, %41 : vector<8x64xf32>
    %43 = vector.broadcast %3 : vector<1x64xf32> to vector<8x64xf32>
    %44 = arith.addf %42, %43 : vector<8x64xf32>
    %45 = arith.truncf %44 : vector<8x64xf32> to vector<8x64xbf16>
    %c0_24 = arith.constant 0 : index
    %c0_25 = arith.constant 0 : index
    %46 = vector.load %arg6[%c0_24, %c0_25] : memref<64x64xbf16, #tpu.memory_space<vmem>>, vector<64x64xbf16>
    %cst_26 = arith.constant dense<0.000000e+00> : vector<8x64xf32>
    %47 = tpu.matmul %45, %46, %cst_26 {dimension_numbers = #tpu.dot_dimension_numbers<[1], [0], [0], [1], [0, 0, 1, 1], [], []>} : vector<8x64xbf16>, vector<64x64xbf16>, vector<8x64xf32> -> vector<8x64xf32>
    %48 = vector.broadcast %4 : vector<1x64xf32> to vector<8x64xf32>
    %49 = arith.addf %47, %48 : vector<8x64xf32>
    %cst_27 = arith.constant 0.000000e+00 : f32
    %50 = vector.broadcast %cst_27 : f32 to vector<8x64xf32>
    %51 = arith.maximumf %49, %50 : vector<8x64xf32>
    %52 = arith.truncf %51 : vector<8x64xf32> to vector<8x64xbf16>
    %c0_28 = arith.constant 0 : index
    %c0_29 = arith.constant 0 : index
    %53 = vector.load %arg7[%c0_28, %c0_29] : memref<64x64xbf16, #tpu.memory_space<vmem>>, vector<64x64xbf16>
    %cst_30 = arith.constant dense<0.000000e+00> : vector<8x64xf32>
    %54 = tpu.matmul %52, %53, %cst_30 {dimension_numbers = #tpu.dot_dimension_numbers<[1], [0], [0], [1], [0, 0, 1, 1], [], []>} : vector<8x64xbf16>, vector<64x64xbf16>, vector<8x64xf32> -> vector<8x64xf32>
    %55 = vector.broadcast %5 : vector<1x64xf32> to vector<8x64xf32>
    %56 = arith.addf %54, %55 : vector<8x64xf32>
    %cst_31 = arith.constant 0.000000e+00 : f32
    %57 = vector.broadcast %cst_31 : f32 to vector<8x64xf32>
    %58 = arith.maximumf %56, %57 : vector<8x64xf32>
    %cst_32 = arith.constant dense<0.000000e+00> : vector<8xf32>
    %59 = vector.multi_reduction <add>, %58, %cst_32 [1] : vector<8x64xf32> to vector<8xf32>
    %60 = vector.shape_cast %59 : vector<8xf32> to vector<8x1xf32>
    %cst_33 = arith.constant 6.400000e+01 : f32
    %61 = vector.broadcast %cst_33 : f32 to vector<8x1xf32>
    %62 = arith.divf %60, %61 : vector<8x1xf32>
    %63 = vector.broadcast %62 : vector<8x1xf32> to vector<8x64xf32>
    %64 = arith.subf %58, %63 : vector<8x64xf32>
    %65 = arith.mulf %64, %64 : vector<8x64xf32>
    %cst_34 = arith.constant dense<0.000000e+00> : vector<8xf32>
    %66 = vector.multi_reduction <add>, %65, %cst_34 [1] : vector<8x64xf32> to vector<8xf32>
    %67 = vector.shape_cast %66 : vector<8xf32> to vector<8x1xf32>
    %cst_35 = arith.constant 6.400000e+01 : f32
    %68 = vector.broadcast %cst_35 : f32 to vector<8x1xf32>
    %69 = arith.divf %67, %68 : vector<8x1xf32>
    %cst_36 = arith.constant 9.99999974E-6 : f32
    %70 = vector.broadcast %cst_36 : f32 to vector<8x1xf32>
    %71 = arith.addf %69, %70 : vector<8x1xf32>
    %72 = math.rsqrt %71 : vector<8x1xf32>
    %73 = vector.broadcast %72 : vector<8x1xf32> to vector<8x64xf32>
    %74 = arith.mulf %64, %73 : vector<8x64xf32>
    %75 = vector.broadcast %6 : vector<1x64xf32> to vector<8x64xf32>
    %76 = arith.mulf %74, %75 : vector<8x64xf32>
    %77 = vector.broadcast %7 : vector<1x64xf32> to vector<8x64xf32>
    %78 = arith.addf %76, %77 : vector<8x64xf32>
    %c0_37 = arith.constant 0 : index
    %c0_38 = arith.constant 0 : index
    %79 = vector.load %arg10[%c0_37, %c0_38] : memref<1x9xf32, #tpu.memory_space<vmem>>, vector<1x9xf32>
    %80 = arith.truncf %78 : vector<8x64xf32> to vector<8x64xbf16>
    %c0_39 = arith.constant 0 : index
    %c0_40 = arith.constant 0 : index
    %81 = vector.load %arg8[%c0_39, %c0_40] : memref<64x9xbf16, #tpu.memory_space<vmem>>, vector<64x9xbf16>
    %cst_41 = arith.constant dense<0.000000e+00> : vector<8x9xf32>
    %82 = tpu.matmul %80, %81, %cst_41 {dimension_numbers = #tpu.dot_dimension_numbers<[1], [0], [0], [1], [0, 0, 1, 1], [], []>} : vector<8x64xbf16>, vector<64x9xbf16>, vector<8x9xf32> -> vector<8x9xf32>
    %83 = vector.broadcast %79 : vector<1x9xf32> to vector<8x9xf32>
    %84 = arith.addf %82, %83 : vector<8x9xf32>
    %85 = tpu.iota {dimensions = array<i32: 1>} : vector<1x9xi32>
    %c6_i32 = arith.constant 6 : i32
    %86 = vector.broadcast %c6_i32 : i32 to vector<1x9xi32>
    %87 = arith.cmpi slt, %85, %86 : vector<1x9xi32>
    %c0_42 = arith.constant 0 : index
    %c0_43 = arith.constant 0 : index
    %88 = vector.load %arg3[%c0_42, %c0_43] : memref<8x9xf32, #tpu.memory_space<vmem>>, vector<8x9xf32>
    %cst_44 = arith.constant 0.000000e+00 : f32
    %89 = vector.shape_cast %87 : vector<1x9xi1> to vector<1x9xi1>
    %90 = vector.broadcast %89 : vector<1x9xi1> to vector<8x9xi1>
    %91 = vector.broadcast %cst_44 : f32 to vector<8x9xf32>
    %92 = arith.select %90, %88, %91 : vector<8x9xi1>, vector<8x9xf32>
    %93 = arith.addf %84, %92 : vector<8x9xf32>
    %c0_45 = arith.constant 0 : index
    %c0_46 = arith.constant 0 : index
    %94 = vector.load %arg11[%c0_45, %c0_46] : memref<8x9xf32, #tpu.memory_space<vmem>>, vector<8x9xf32>
    tpu.vector_store %arg11[%c0_45, %c0_46], %93 {strides = array<i32>} : memref<8x9xf32, #tpu.memory_space<vmem>>, vector<8x9xf32>,
    return
  }
  func.func @transform_0(%arg0: i32) -> (i32, i32) {
    %c0_i32 = arith.constant 0 : i32
    %c0_i32_0 = arith.constant 0 : i32
    return %arg0, %c0_i32 : i32, i32
  }
  func.func @transform_1(%arg0: i32) -> (i32, i32) {
    %c0_i32 = arith.constant 0 : i32
    %c0_i32_0 = arith.constant 0 : i32
    return %arg0, %c0_i32 : i32, i32
  }
  func.func @transform_2(%arg0: i32) -> (i32, i32) {
    %c0_i32 = arith.constant 0 : i32
    %c0_i32_0 = arith.constant 0 : i32
    return %arg0, %c0_i32 : i32, i32
  }
  func.func @transform_3(%arg0: i32) -> (i32, i32) {
    %c0_i32 = arith.constant 0 : i32
    %c0_i32_0 = arith.constant 0 : i32
    %c0_i32_1 = arith.constant 0 : i32
    return %c0_i32, %c0_i32_0 : i32, i32
  }
  func.func @transform_4(%arg0: i32) -> (i32, i32) {
    %c0_i32 = arith.constant 0 : i32
    %c0_i32_0 = arith.constant 0 : i32
    %c0_i32_1 = arith.constant 0 : i32
    return %c0_i32, %c0_i32_0 : i32, i32
  }
  func.func @transform_5(%arg0: i32) -> (i32, i32) {
    %c0_i32 = arith.constant 0 : i32
    %c0_i32_0 = arith.constant 0 : i32
    %c0_i32_1 = arith.constant 0 : i32
    return %c0_i32, %c0_i32_0 : i32, i32
  }
  func.func @transform_6(%arg0: i32) -> (i32, i32) {
    %c0_i32 = arith.constant 0 : i32
    %c0_i32_0 = arith.constant 0 : i32
    %c0_i32_1 = arith.constant 0 : i32
    return %c0_i32, %c0_i32_0 : i32, i32
  }
  func.func @transform_7(%arg0: i32) -> (i32, i32) {
    %c0_i32 = arith.constant 0 : i32
    %c0_i32_0 = arith.constant 0 : i32
    %c0_i32_1 = arith.constant 0 : i32
    return %c0_i32, %c0_i32_0 : i32, i32
  }
  func.func @transform_8(%arg0: i32) -> (i32, i32) {
    %c0_i32 = arith.constant 0 : i32
    %c0_i32_0 = arith.constant 0 : i32
    %c0_i32_1 = arith.constant 0 : i32
    return %c0_i32, %c0_i32_0 : i32, i32
  }
  func.func @transform_9(%arg0: i32) -> (i32, i32) {
    %c0_i32 = arith.constant 0 : i32
    %c0_i32_0 = arith.constant 0 : i32
    %c0_i32_1 = arith.constant 0 : i32
    return %c0_i32, %c0_i32_0 : i32, i32
  }
  func.func @transform_10(%arg0: i32) -> (i32, i32) {
    %c0_i32 = arith.constant 0 : i32
    %c0_i32_0 = arith.constant 0 : i32
    return %arg0, %c0_i32 : i32, i32
  }
}

</mosaic_0001>

<bundles_post_ra>
// kernel: tpu_custom_call.1
= control target key start
LH: loop header
LB: loop body
LE: loop exit
PB: predicated region body
PF: predicated region fallthrough
CT: control target
= control target key end

     0   :  { %s2035_s0 = inlined_call_operand.vmem [shape: f32[16,64], index: 0, kind: input, shape index: {}]   ;;  %s2036_s1 = inlined_call_operand.hbm [shape: f32[16,64], index: 1, kind: input, shape index: {}]   ;;  %s2037_s2 = inlined_call_operand.hbm [shape: f32[16,9], index: 2, kind: input, shape index: {}]   ;;  %s2038_s3 = inlined_call_operand.vmem [shape: bf16[64,64], index: 3, kind: input, shape index: {}]   ;;  %s2039_s4 = inlined_call_operand.hbm [shape: bf16[64,64], index: 4, kind: input, shape index: {}]   ;;  %s2040_s5 = inlined_call_operand.hbm [shape: bf16[64,64], index: 5, kind: input, shape index: {}]   ;;  %s2041_s6 = inlined_call_operand.hbm [shape: bf16[64,64], index: 6, kind: input, shape index: {}]   ;;  %s2042_s7 = inlined_call_operand.vmem [shape: bf16[64,9], index: 7, kind: input, shape index: {}]   ;;  %s2043_s8 = inlined_call_operand.vmem [shape: f32[8,64], index: 8, kind: input, shape index: {}]   ;;  %s2044_s9 = inlined_call_operand.vmem [shape: f32[1,9], index: 9, kind: input, shape index: {}]   ;;  %s2045_s10 = inlined_call_operand.hbm [shape: f32[16,9], index: 10, kind: output, shape index: {}]  }
   0x1   :  { %2053 = sst [smem:[#allocation19_spill]] %s2039_s4 }
   0x2   :  { %2054 = sst [smem:[#allocation20_spill]] %s2040_s5 }
   0x3   :  { %2055 = sst [smem:[#allocation21_spill]] %s2041_s6 }
   0x4   :  { %2056 = sst [smem:[#allocation22_spill]] %s2044_s9 }
   0x5   :  { %2057 = sst [smem:[#allocation23_spill]] %s2045_s10 }
   0x6   :  { %15 = vsyncpa [#allocation3], 0 }
   0x7   :  { %17 = vsyncpa [#allocation3 + $0x1], 0 }
   0x8   :  { %18 = vsyncpa [#allocation6], 0 }
   0x9   :  { %20 = vsyncpa [#allocation6 + $0x1], 0 }
   0xa   :  { %21 = vsyncpa [#allocation9], 0 }
   0xb   :  { %22 = vsyncpa [#allocation4], 0 }
   0xc   :  { %24 = vsyncpa [#allocation4 + $0x1], 0  ;;  %s1636_s13 = smov 0   ;;  %s1638_s14 = smov 0  }
   0xd   :  { %s1640_s15 = smov 0   ;;  %s1642_s16 = smov 0  }
   0xe LB: > { %2058 = sst [smem:[#allocation17_spill]] %s1557_s13  ;;  %s1657_s17 = sadd.s32 4294967295, %s1569_s16   ;;  %s1569_s16 = sphi %s1642_s16, %s2088_s16   ;;  %s1565_s15 = sphi %s1640_s15, %s2087_s15   ;;  %s1561_s14 = sphi %s1638_s14, %s2086_s14   ;;  %s1557_s13 = sphi %s1636_s13, %s2085_s13  }
   0xf   : > { %s1096_s18 = sadd.s32 4294967294, %s1569_s16   ;;  %p76_p0 = scmp.ne.s32.totalorder %s1561_s14, %s1557_s13 }
  0x10   : > { %p2046_p1 = scmp.eq.s32.totalorder %s1657_s17, 0  ;;  %p279_p3 = scmp.eq.s32.totalorder %s1096_s18, 1 }
  0x11   : > { %p1097_p5 = scmp.ge.s32.totalorder %s1569_s16, 1  ;;  %p286_p7 = scmp.lt.s32.totalorder %s1569_s16, 3 }
  0x12   : > { %p1666_p4 = por %p2046_p1, %p76_p0  ;;  %p1671_p6 = por %p279_p3, %p76_p0 }
  0x13   : > { %p1676_p8 = pnand %p1097_p5, %p286_p7  ;;  %s1571_s22 = smov [#allocation7]  }
  0x14   : > { %s2059_s19 = scalar_select %p1666_p4, 1, 0 }
  0x15   : > { %s2060_s20 = scalar_select %p1671_p6, 1, 0 }
  0x16   : > { %s2062_s21 = scalar_select %p1676_p8, 1, 0 }
  0x17   : > { %2061 = sst [smem:[#allocation18_spill]] %s2060_s20  ;;  %s301_s23 = sshll.u32 %s1571_s22, 4  ;;  %s1680_s23 = int_to_ptr.vmem [resolvable:$true] %s301_s23 }
  0x18   : > { %p1255_p9 = pneg %p1676_p8  ;;  %s1572_s25 = smov [#allocation8]  }
  0x19   : > { %s314_s26 = sshll.u32 %s1572_s25, 4  ;;  %s1573_s27 = smov [#allocation10]   ;;  %s1691_s26 = int_to_ptr.vmem [resolvable:$true] %s314_s26 }
  0x1a   : > { %p1687_p11 = pnand %p1255_p9, %p2046_p1  ;;  %s1693_s28 = sshll.u32 %s1573_s27, 4  ;;  %s328_s28 = int_to_ptr.vmem [resolvable:$true] %s1693_s28 }
  0x1b   : > { %s2064_s4 = sld [smem:[#allocation19_spill]] }
  0x1c   : > { %p1703_p13 = pneg %p1687_p11 }
  0x21   : > { %s1347_s11 = scalar_lea.hbm %s2064_s4, 512 }
  0x22   : > { %p1348_p12 = scmp.ne.s32.totalorder %s2064_s4, %s1347_s11  ;;  %p1354_p5 = scmp.lt.u32.totalorder %s1347_s11, %s2064_s4 }
  0x24   : > { %p1350_p0 = pnand %p1703_p13, %p1348_p12 }
  0x26   : > { %p1351_p3 = pneg %p1350_p0 }
  0x28   : > { %p1356_p7 = pnand %p1354_p5, %p1351_p3 }
  0x2a   : > { %1359 = shalt.err (!%p1356_p7)
}
  0x2b   : > { %s1360_s29 = scalar_lea.vmem %s1680_s23, 512  ;;  %p1368_p2 = scmp.lt.s32.totalorder %s1680_s23, %s1680_s23 }
  0x2c   : > { %p1361_p9 = scmp.ne.s32.totalorder %s1680_s23, %s1360_s29  ;;  %p1369_p6 = scmp.lt.s32.totalorder %s1360_s29, %s1360_s29 }
  0x2e   : > { %p1363_p10 = pnand %p1361_p9, %p1703_p13  ;;  %p1370_p12 = por %p1369_p6, %p1368_p2 }
  0x30   : > { %p1364_p1 = pneg %p1363_p10 }
  0x32   : > { %p1371_p0 = pnand %p1370_p12, %p1364_p1 }
  0x34   : > { %1374 = shalt.err (!%p1371_p0)
}
  0x35   : > { %s1574_s30 = smov 64   ;;  %s1575_s11 = smov 4  }
  0x36   : > { %1258 = dma.hbm_to_vmem [thread:$0]  (!%p1687_p11), %s2064_s4, 512, %s1680_s23, [#allocation6], %s1574_s30, %s1574_s30, %s1575_s11  }
  0x37   : > { %s2066_s5 = sld [smem:[#allocation20_spill]] }
  0x3d   : > { %s1375_s29 = scalar_lea.hbm %s2066_s5, 512 }
  0x3e   : > { %p1376_p1 = scmp.ne.s32.totalorder %s2066_s5, %s1375_s29  ;;  %p1382_p10 = scmp.lt.u32.totalorder %s1375_s29, %s2066_s5 }
  0x40   : > { %p1378_p2 = pnand %p1376_p1, %p1703_p13 }
  0x42   : > { %p1379_p6 = pneg %p1378_p2 }
  0x44   : > { %p1384_p3 = pnand %p1382_p10, %p1379_p6 }
  0x46   : > { %1387 = shalt.err (!%p1384_p3)
}
  0x47   : > { %s1388_s23 = scalar_lea.vmem %s1691_s26, 512  ;;  %p1396_p12 = scmp.lt.s32.totalorder %s1691_s26, %s1691_s26 }
  0x48   : > { %p1389_p5 = scmp.ne.s32.totalorder %s1691_s26, %s1388_s23  ;;  %p1397_p0 = scmp.lt.s32.totalorder %s1388_s23, %s1388_s23 }
  0x4a   : > { %p1391_p7 = pnand %p1389_p5, %p1703_p13  ;;  %p1398_p1 = por %p1397_p0, %p1396_p12 }
  0x4c   : > { %p1392_p9 = pneg %p1391_p7 }
  0x4e   : > { %p1399_p2 = pnand %p1398_p1, %p1392_p9 }
  0x50   : > { %1402 = shalt.err (!%p1399_p2)
}
  0x51   : > { %1261 = dma.hbm_to_vmem [thread:$0]  (!%p1687_p11), %s2066_s5, 512, %s1691_s26, [#allocation9], %s1574_s30, %s1574_s30, %s1575_s11  }
  0x52   : > { %s2067_s6 = sld [smem:[#allocation21_spill]] }
  0x58   : > { %s1403_s12 = scalar_lea.hbm %s2067_s6, 512 }
  0x59   : > { %p1404_p6 = scmp.ne.s32.totalorder %s2067_s6, %s1403_s12  ;;  %p1410_p5 = scmp.lt.u32.totalorder %s1403_s12, %s2067_s6 }
  0x5b   : > { %p1406_p10 = pnand %p1404_p6, %p1703_p13 }
  0x5d   : > { %p1407_p3 = pneg %p1406_p10 }
  0x5f   : > { %p1412_p7 = pnand %p1410_p5, %p1407_p3 }
  0x61   : > { %1415 = shalt.err (!%p1412_p7)
}
  0x62   : > { %s1416_s23 = scalar_lea.vmem %s328_s28, 512  ;;  %p1424_p1 = scmp.lt.s32.totalorder %s328_s28, %s328_s28 }
  0x63   : > { %p1417_p9 = scmp.ne.s32.totalorder %s328_s28, %s1416_s23  ;;  %p1425_p2 = scmp.lt.s32.totalorder %s1416_s23, %s1416_s23 }
  0x65   : > { %p1419_p12 = pnand %p1417_p9, %p1703_p13  ;;  %p1426_p4 = por %p1425_p2, %p1424_p1 }
  0x67   : > { %p1420_p0 = pneg %p1419_p12 }
  0x69   : > { %p1427_p8 = pnand %p1426_p4, %p1420_p0 }
  0x6b   : > { %1430 = shalt.err (!%p1427_p8)
}
  0x6c   : > { %1264 = dma.hbm_to_vmem [thread:$0]  (!%p1687_p11), %s2067_s6, 512, %s328_s28, [#allocation9], %s1574_s30, %s1574_s30, %s1575_s11  }
  0x6d   : > { %s1776_s22 = sadd.s32 1, %s1569_s16   ;;  %s63_s10 = sadd.s32 1, %s1565_s15 }
  0x6e   : > { %s60_s24 = ssub.s32 %s1569_s16, %s1776_s22  ;;  %p70_p8 = scmp.ne.s32.totalorder %s1565_s15, %s1561_s14 }
  0x6f   : > { %p61_p4 = scmp.eq.s32.totalorder %s60_s24, 0  ;;  %p71_p13 = scmp.eq.s32.totalorder %s1569_s16, 0 }
  0x70   : > { %p1279_p6 = scmp.lt.s32.totalorder %s1569_s16, 2  ;;  %p2068_p3 = scmp.eq.s32.totalorder %s1657_s17, 1 }
  0x71   : > { %s1786_s13 = scalar_select %p61_p4, %s1565_s15, %s63_s10  }
  0x72   : > { %p72_p10 = por %p71_p13, %p70_p8  ;;  %p1790_p5 = por %p2068_p3, %p70_p8 }
  0x73   : > { %s357_s12 = sand.u32 1, %s1565_s15   ;;  %s1103_s18 = sshll.u32 %s1569_s16, 7 }
  0x74   : > { %s2069_s20 = scalar_select %p1790_p5, 1, 0 }
  0x75   : > { %s1796_s28 = sshll.u32 %s357_s12, 3  ;;  %s1801_s25 = scalar_lea.hbm %s2036_s1, %s1103_s18 }
  0x76   : > { %s361_s27 = scalar_lea.vmem [#allocation2], %s1796_s28  ;;  %p1804_p11 = pnand %p1279_p6, %p72_p10 }
  0x77   : > { %s368_s29 = sshll.u32 %s361_s27, 4  ;;  %s1813_s24 = scalar_lea.hbm %s2037_s2, %s1103_s18  ;;  %s1808_s29 = int_to_ptr.vmem [resolvable:$true] %s368_s29 }
  0x78   : > { %s358_s10 = scalar_lea.sflag [#allocation3], %s357_s12  ;;  %s1431_s30 = scalar_lea.hbm %s1801_s25, 128 }
  0x79   : > { %p1432_p7 = scmp.ne.s32.totalorder %s1801_s25, %s1431_s30  ;;  %p1433_p9 = pneg %p1804_p11 }
  0x7a   : > { %s1436_s4 = scalar_lea.hbm %s2036_s1, 256  ;;  %p1437_p1 = scmp.lt.u32.totalorder %s1801_s25, %s2036_s1 }
  0x7b   : > { %p1434_p12 = pnand %p1433_p9, %p1432_p7  ;;  %p1438_p2 = scmp.lt.u32.totalorder %s1436_s4, %s1431_s30 }
  0x7c   : > { %p1440_p8 = scmp.lt.u32.totalorder %s1431_s30, %s1801_s25 }
  0x7d   : > { %p1435_p0 = pneg %p1434_p12  ;;  %p1439_p4 = por %p1438_p2, %p1437_p1 }
  0x7f   : > { %p1441_p13 = por %p1440_p8, %p1439_p4 }
  0x81   : > { %p1442_p6 = pnand %p1441_p13, %p1435_p0 }
  0x83   : > { %1445 = shalt.err (!%p1442_p6)
}
  0x84   : > { %s1446_s12 = scalar_lea.vmem %s1808_s29, 128  ;;  %s1576_s18 = smov [#allocation2]  }
  0x85   : > { %p1447_p10 = scmp.ne.s32.totalorder %s1808_s29, %s1446_s12  ;;  %s1451_s26 = sshll.u32 %s1576_s18, 4  ;;  %s1452_s26 = int_to_ptr.vmem [resolvable:$false] %s1451_s26 }
  0x86   : > { %s1453_s5 = scalar_lea.vmem %s1452_s26, 256  ;;  %p1454_p12 = scmp.lt.s32.totalorder %s1808_s29, %s1452_s26 }
  0x87   : > { %p1449_p3 = pnand %p1447_p10, %p1433_p9  ;;  %p1455_p1 = scmp.lt.s32.totalorder %s1453_s5, %s1446_s12 }
  0x89   : > { %p1450_p7 = pneg %p1449_p3  ;;  %p1456_p2 = por %p1455_p1, %p1454_p12 }
  0x8b   : > { %p1457_p4 = pnand %p1456_p2, %p1450_p7 }
  0x8d   : > { %1460 = shalt.err (!%p1457_p4)
}
  0x8e   : > { %1268 = dma.hbm_to_vmem [thread:$0]  (!%p1804_p11), %s1801_s25, 128, %s1808_s29, %s358_s10  }
  0x8f   : > { %s375_s4 = sand.u32 1, %s1569_s16   ;;  %s379_s6 = scalar_lea.vmem [#allocation5], %s1796_s28 }
  0x90   : > { %s386_s9 = sshll.u32 %s379_s6, 4  ;;  %s376_s30 = scalar_lea.sflag [#allocation6], %s375_s4  ;;  %s387_s9 = int_to_ptr.vmem [resolvable:$true] %s386_s9 }
  0x91   : > { %s1461_s11 = scalar_lea.hbm %s1813_s24, 128  ;;  %s1466_s18 = scalar_lea.hbm %s2037_s2, 256 }
  0x92   : > { %p1462_p0 = scmp.ne.s32.totalorder %s1813_s24, %s1461_s11  ;;  %p1467_p6 = scmp.lt.u32.totalorder %s1813_s24, %s2037_s2 }
  0x93   : > { %p1468_p10 = scmp.lt.u32.totalorder %s1466_s18, %s1461_s11  ;;  %p1470_p7 = scmp.lt.u32.totalorder %s1461_s11, %s1813_s24 }
  0x94   : > { %p1464_p8 = pnand %p1462_p0, %p1433_p9 }
  0x95   : > { %p1469_p3 = por %p1468_p10, %p1467_p6 }
  0x96   : > { %p1465_p13 = pneg %p1464_p8 }
  0x97   : > { %p1471_p12 = por %p1470_p7, %p1469_p3 }
  0x99   : > { %p1472_p1 = pnand %p1471_p12, %p1465_p13 }
  0x9b   : > { %1475 = shalt.err (!%p1472_p1)
}
  0x9c   : > { %s1476_s28 = scalar_lea.vmem %s387_s9, 128  ;;  %s1577_s25 = smov [#allocation5]  }
  0x9d   : > { %p1477_p2 = scmp.ne.s32.totalorder %s387_s9, %s1476_s28  ;;  %s1481_s29 = sshll.u32 %s1577_s25, 4  ;;  %s1482_s29 = int_to_ptr.vmem [resolvable:$false] %s1481_s29 }
  0x9e   : > { %s1483_s10 = scalar_lea.vmem %s1482_s29, 256  ;;  %p1484_p8 = scmp.lt.s32.totalorder %s387_s9, %s1482_s29 }
  0x9f   : > { %p1479_p4 = pnand %p1477_p2, %p1433_p9  ;;  %p1485_p5 = scmp.lt.s32.totalorder %s1483_s10, %s1476_s28 }
  0xa1   : > { %p1480_p0 = pneg %p1479_p4  ;;  %p1486_p6 = por %p1485_p5, %p1484_p8 }
  0xa3   : > { %p1487_p10 = pnand %p1486_p6, %p1480_p0 }
  0xa5   : > { %1490 = shalt.err (!%p1487_p10)
}
  0xa6   : > { %1271 = dma.hbm_to_vmem [thread:$0]  (!%p1804_p11), %s1813_s24, 128, %s387_s9, %s376_s30  }
  0xa7   : > { %p2071_p13 = scmp.ne.s32.totalorder %s2062_s21, 0 }
  0xa8   : > { %s1864_s4 = sand.u32 (!%p2071_p13), 1, %s1561_s14   ;;  %p2072_p5 = scmp.ne.s32.totalorder (!%p2071_p13), %s2059_s19, 0 }
  0xa9   : > { %395 = sbr.rel (%p2071_p13) target bundleno = 1933 (0x78d), region = 60  ;;  %s1867_s6 = sshll.u32 (!%p2071_p13), %s1864_s4, 3 }
  0xaa   : > { %s398_s11 = scalar_lea.sflag (!%p2071_p13), [#allocation3], %s1864_s4  ;;  %s401_s27 = scalar_lea.vmem (!%p2071_p13), [#allocation2], %s1867_s6 }
  0xb0   : > { %1536 = dma.done.wait (%p2072_p5), %s398_s11, 128  }
  0xb1   : > { %1538 = vsyncadd (%p2072_p5), %s398_s11, 4294967168  ;;  %s406_s21 = sand.u32 1, %s1657_s17   ;;  %s410_s24 = scalar_lea.vmem [#allocation5], %s1867_s6 }
  0xb2   : > { %s407_s23 = scalar_lea.sflag [#allocation6], %s406_s21 }
  0xb3   : > { %1540 = dma.done.wait (%p2072_p5), %s407_s23, 128  }
  0xb4   : > { %1542 = vsyncadd (%p2072_p5), %s407_s23, 4294967168  ;;  %p2073_p11 = scmp.eq.s32.totalorder %s1657_s17, 0 }
  0xb6   : > { %1544 = dma.done.wait (%p2073_p11), [#allocation6], 512   ;;  %p2074_p9 = pmov %p2073_p11 }
  0xb8   : > { %1546 = vsyncadd (%p2074_p9), [#allocation6], 4294966784  ;;  %p2075_p3 = pmov %p2074_p9 }
  0xba   : > { %1548 = dma.done.wait (%p2075_p3), [#allocation9], 1024   ;;  %p2076_p7 = pmov %p2075_p3 }
  0xbb   : > { %p468_p12 = scmp.lt.s32.totalorder %s1657_s17, 1  ;;  %v1578_v0 = vmov 0.0   ;;  %vm1579_vm0 = vmmov 0   ;;  %v1323_v1 = vld [vmem:[%s2038_s3] sm:$0xff]   ;;  %v1324_v2 = vld [vmem:[%s2038_s3 + $0x8] sm:$0xff]   ;;  %v1325_v3 = vld [vmem:[%s2038_s3 + $0x10] sm:$0xff]  }
  0xbc   : > { %1550 = vsyncadd (%p2076_p7), [#allocation9], 4294966272  ;;  %1177 = vmatprep.subr.bf16.mxu0 %v1578_v0  ;;  %1185 = vmatprep.mubr.msk.bf16.mxu0 %vm1579_vm0, %v1578_v0  ;;  %v1327_v5 = vld [vmem:[#allocation7] sm:$0xff]   ;;  %vm521_vm1 = vcmask 523264   ;;  %v1328_v7 = vld [vmem:[#allocation7 + $0x8] sm:$0xff]   ;;  %s2077_s29 = sld [smem:[#allocation22_spill]] }
  0xbd   : > { %s469_s19 = scalar_select %p468_p12, %s1657_s17, 1  ;;  %1189 = vmatprep.subr.bf16.mxu1 %v1578_v0  ;;  %1197 = vmatprep.mubr.msk.bf16.mxu1 %vm1579_vm0, %v1578_v0  ;;  %v482_v6 = vld [vmem:[%s401_s27] sm:$0xff]  ;;  %v1326_v8 = vld [vmem:[%s2038_s3 + $0x18] sm:$0xff]   ;;  %v1329_v11 = vld [vmem:[#allocation7 + $0x10] sm:$0xff]   ;;  %vm947_vm3 = vcmask 72704  }
  0xbe   : > { %1178 = vmatpush3.bf16.msra.mxu0 %v1323_v1  ;;  %1190 = vmatpush3.bf16.msra.mxu1 %v1327_v5  ;;  %v1330_v12 = vld [vmem:[#allocation7 + $0x18] sm:$0xff]   ;;  %v1114_v13 = vld [vmem:[%s2043_s8] ss:$0 sm:$0xff]  ;;  %v1120_v21 = vld [vmem:[%s2043_s8 + $0x1] ss:$0 sm:$0xff]  ;;  %s1149_s10 = sshll.u32 %s1657_s17, 7 }
  0xbf   : > { %s1113_s9 = sshll.u32 %s469_s19, 3  ;;  %1179 = vmatprep.subr.bf16.mxu0 %v1578_v0  ;;  %1191 = vmatprep.subr.bf16.mxu1 %v1578_v0  ;;  %v1331_v34 = vld [vmem:[#allocation8] sm:$0xff]   ;;  %v1332_v35 = vld [vmem:[#allocation8 + $0x8] sm:$0xff]   ;;  %v1333_v36 = vld [vmem:[#allocation8 + $0x10] sm:$0xff]   ;;  %s467_s11 = scalar_lea.vmem [#allocation11], %s1867_s6 }
  0xc0   : > { %s471_s5 = scalar_lea.vmem %s2035_s0, %s1113_s9  ;;  %v1334_v37 = vld [vmem:[#allocation8 + $0x18] sm:$0xff]   ;;  %v1335_v38 = vld [vmem:[#allocation10] sm:$0xff]   ;;  %v1336_v39 = vld [vmem:[#allocation10 + $0x8] sm:$0xff]   ;;  %s963_s21 = sshll.u32 %s467_s11, 4  ;;  %s1993_s21 = int_to_ptr.vmem [resolvable:$true] %s963_s21 }
  0xc1   : > { %v481_v4 = vld [vmem:[%s471_s5] sm:$0xff]  ;;  %v1337_v50 = vld [vmem:[#allocation10 + $0x10] sm:$0xff]   ;;  %v1338_v51 = vld [vmem:[#allocation10 + $0x18] sm:$0xff]   ;;  %s950_s17 = scalar_lea.sflag [#allocation4], %s1864_s4  ;;  %s1491_s6 = scalar_lea.vmem %s1993_s21, 128 }
  0xc2   : > { %1180 = vmatpush3.bf16.msra.mxu0 %v1324_v2  ;;  %v483_v9 = vadd.f32 %v482_v6, %v481_v4  ;;  %1192 = vmatpush3.bf16.msra.mxu1 %v1328_v7  ;;  %v1126_v44 = vld [vmem:[%s2043_s8 + $0x2] ss:$0 sm:$0xff]  ;;  %v1127_v46 = vld [vmem:[%s2043_s8 + $0x3] ss:$0 sm:$0xff]  ;;  %v1128_v52 = vld [vmem:[%s2043_s8 + $0x4] ss:$0 sm:$0xff]  ;;  %p1492_p1 = scmp.ne.s32.totalorder %s1993_s21, %s1491_s6 }
  0xc3   : > { %1181 = vmatprep.subr.bf16.mxu0 %v1578_v0  ;;  %1193 = vmatprep.subr.bf16.mxu1 %v1578_v0  ;;  %v1134_v60 = vld [vmem:[%s2043_s8 + $0x5] ss:$0 sm:$0xff]  ;;  %p2079_p2 = scmp.ne.s32.totalorder %s2069_s20, 0  ;;  %s1580_s9 = smov [#allocation11]  }
  0xc4   : > { %v484_v10 = vpack.c.bf16 %v483_v9, %v483_v9  ;;  %s1495_s30 = sshll.u32 %s1580_s9, 4  ;;  %s1496_s30 = int_to_ptr.vmem [resolvable:$false] %s1495_s30 }
  0xc5   : > { %p1493_p4 = pnand %p1492_p1, %p2079_p2  ;;  %s1497_s12 = scalar_lea.vmem %s1496_s30, 256 }
  0xc6   : > { %1182 = vmatpush3.bf16.msra.mxu0 %v1325_v3  ;;  %1194 = vmatpush3.bf16.msra.mxu1 %v1329_v11  ;;  %v1340_v11 = vld [vmem:[%s2042_s7 + $0x8] sm:$0xff]   ;;  %p1498_p8 = scmp.lt.s32.totalorder %s1993_s21, %s1496_s30  ;;  %p1499_p6 = scmp.lt.s32.totalorder %s1497_s12, %s1491_s6 }
  0xc7   : > { %1183 = vmatprep.subr.bf16.mxu0 %v1578_v0  ;;  %1195 = vmatprep.subr.bf16.mxu1 %v1578_v0  ;;  %p1494_p0 = pneg %p1493_p4 }
  0xc8   : > { %p1500_p10 = por %p1499_p6, %p1498_p8 }
  0xca   : > { %1184 = vmatpush3.bf16.msra.mxu0 %v1326_v8  ;;  %1196 = vmatpush3.bf16.msra.mxu1 %v1330_v12  ;;  %v1341_v12 = vld [vmem:[%s2042_s7 + $0x10] sm:$0xff]   ;;  %p1501_p13 = pnand %p1500_p10, %p1494_p0 }
  0xcb   : > { %1201 = vmatprep.subr.bf16.mxu0 %v1578_v0  ;;  %1213 = vmatprep.subr.bf16.mxu1 %v1578_v0 }
  0xcd   : > { %1186 = vmatmul.mubr.msk.bf16.vlgmr.msra.gmra.mrb[0].mxu0 %vm521_vm1, %v484_v10  ;;  %v1339_v10 = vld [vmem:[%s2042_s7] sm:$0xff]  }
  0xce   : > { %1209 = vmatprep.mubr.msk.bf16.mxu0 %vm1579_vm0, %v1578_v0  ;;  %1202 = vmatpush3.bf16.msra.mxu0 %v1331_v34 }
  0xcf   : > { %1203 = vmatprep.subr.bf16.mxu0 %v1578_v0 }
  0xd2   : > { %1204 = vmatpush3.bf16.msra.mxu0 %v1332_v35 }
  0xd3   : > { %1205 = vmatprep.subr.bf16.mxu0 %v1578_v0 }
  0xd6   : > { %1206 = vmatpush3.bf16.msra.mxu0 %v1333_v36 }
  0xd7   : > { %1207 = vmatprep.subr.bf16.mxu0 %v1578_v0 }
  0xda   : > { %1208 = vmatpush3.bf16.msra.mxu0 %v1334_v37 }
  0xdb   : > { %1225 = vmatprep.subr.bf16.mxu0 %v1578_v0 }
 0x1a0   : > { %v559_v14 = vpop.f32.mrb[0].mxu0 }
 0x1a1   : > { %v560_v15 = vadd.f32 %v1114_v13, %v559_v14  ;;  %v1187_v16 = vpop.f32.mrb[1].mxu0  ;;  %v1342_v13 = vld [vmem:[%s2042_s7 + $0x18] sm:$0xff]  }
 0x1a2   : > { %v562_v17 = vpop.f32.mrb[2].mxu0 }
 0x1a3   : > { %v565_v18 = vmax.f32 %v560_v15, 0.0  ;;  %v1188_v19 = vpop.f32.mrb[3].mxu0 }
 0x1a5   : > { %v566_v20 = vpack.c.bf16 %v565_v18, %v565_v18  ;;  %v1140_v18 = vld [vmem:[%s2043_s8 + $0x6] ss:$0 sm:$0xff] }
 0x1a7   : > { %1198 = vmatmul.mubr.msk.bf16.vlgmr.msra.gmra.mrb[0].mxu1 %vm521_vm1, %v566_v20 }
 0x1a8   : > { %1221 = vmatprep.mubr.msk.bf16.mxu1 %vm1579_vm0, %v1578_v0  ;;  %1214 = vmatpush3.bf16.msra.mxu1 %v1335_v38 }
 0x1a9   : > { %1215 = vmatprep.subr.bf16.mxu1 %v1578_v0 }
 0x1ac   : > { %1216 = vmatpush3.bf16.msra.mxu1 %v1336_v39 }
 0x1ad   : > { %1217 = vmatprep.subr.bf16.mxu1 %v1578_v0 }
 0x1b0   : > { %1218 = vmatpush3.bf16.msra.mxu1 %v1337_v50 }
 0x1b1   : > { %1219 = vmatprep.subr.bf16.mxu1 %v1578_v0 }
 0x1b4   : > { %1220 = vmatpush3.bf16.msra.mxu1 %v1338_v51 }
 0x27a   : > { %v640_v22 = vpop.f32.mrb[0].mxu1 }
 0x27b   : > { %v641_v23 = vadd.f32 %v1120_v21, %v640_v22  ;;  %v1199_v24 = vpop.f32.mrb[1].mxu1 }
 0x27c   : > { %v643_v25 = vpop.f32.mrb[2].mxu1 }
 0x27d   : > { %v646_v26 = vmax.f32 %v641_v23, 0.0  ;;  %v1200_v27 = vpop.f32.mrb[3].mxu1  ;;  %v939_v23 = vlaneseq  ;;  %v942_v25 = vld [vmem:[%s410_s24] sm:$0xff]  ;;  %s2078_s24 = sld [smem:[#allocation23_spill]] }
 0x27f   : > { %v647_v28 = vsel %vm521_vm1, %v646_v26, 0.0  ;;  %v940_v24 = vand.u32 127, %v939_v23 }
 0x280   : > { %648 = vadd.xlane.f32.xlu0 %v647_v28 }
 0x281   : > { %vm941_vm2 = vcmp.lt.s32.totalorder %v940_v24, 6 }
 0x282   : > { %v945_v28 = vsel %vm941_vm2, %v942_v25, 0.0 }
 0x283   : > { %s1991_s19 = scalar_lea.hbm %s2078_s24, %s1149_s10 }
 0x30d   : > { %v649_v29 = vpop.xlane.xlu0 %648 }
 0x30e   : > { %v651_v30 = vmul.f32 0.015625, %v649_v29 }
 0x310   : > { %v652_v31 = vsub.f32 %v646_v26, %v651_v30  ;;  %v1142_v26 = vld [vmem:[%s2077_s29] ss:$0 sm:$0xff] }
 0x312   : > { %v653_v32 = vmul.f32 %v652_v31, %v652_v31 }
 0x314   : > { %v654_v33 = vsel %vm521_vm1, %v653_v32, 0.0 }
 0x315   : > { %655 = vadd.xlane.f32.xlu0 %v654_v33 }
 0x3a2   : > { %v656_v40 = vpop.xlane.xlu0 %655 }
 0x3a3   : > { %v657_v41 = vmul.f32 0.015625, %v656_v40 }
 0x3a5   : > { %v658_v42 = vadd.f32 1e-05, %v657_v41 }
 0x3a7   : > { %1343 = vrsqrt.f32 %v658_v42 }
 0x3b1   : > { %v1344_v43 = vpop.eup %1343 }
 0x3b2   : > { %v660_v45 = vmul.f32 %v1344_v43, %v652_v31 }
 0x3b4   : > { %v665_v47 = vmul.f32 %v1126_v44, %v660_v45 }
 0x3b6   : > { %v670_v48 = vadd.f32 %v1127_v46, %v665_v47 }
 0x3b8   : > { %v671_v49 = vpack.c.bf16 %v670_v48, %v670_v48 }
 0x3ba   : > { %1210 = vmatmul.mubr.msk.bf16.vlgmr.msra.gmra.mrb[4].mxu0 %vm521_vm1, %v671_v49 }
 0x3bb   : > { %1233 = vmatprep.mubr.msk.bf16.mxu0 %vm1579_vm0, %v1578_v0  ;;  %1226 = vmatpush3.bf16.msra.mxu0 %v1339_v10 }
 0x3bc   : > { %1227 = vmatprep.subr.bf16.mxu0 %v1578_v0 }
 0x3bf   : > { %1228 = vmatpush3.bf16.msra.mxu0 %v1340_v11 }
 0x3c0   : > { %1229 = vmatprep.subr.bf16.mxu0 %v1578_v0 }
 0x3c3   : > { %1230 = vmatpush3.bf16.msra.mxu0 %v1341_v12 }
 0x3c4   : > { %1231 = vmatprep.subr.bf16.mxu0 %v1578_v0  ;;  %v1141_v0 = vld [vmem:[%s2043_s8 + $0x7] ss:$0 sm:$0xff] }
 0x3c7   : > { %1232 = vmatpush3.bf16.msra.mxu0 %v1342_v13 }
 0x48d   : > { %v745_v53 = vpop.f32.mrb[4].mxu0 }
 0x48e   : > { %v746_v54 = vadd.f32 %v1128_v52, %v745_v53  ;;  %v1211_v55 = vpop.f32.mrb[5].mxu0 }
 0x48f   : > { %v748_v56 = vpop.f32.mrb[6].mxu0 }
 0x490   : > { %v751_v57 = vmax.f32 %v746_v54, 0.0  ;;  %v1212_v58 = vpop.f32.mrb[7].mxu0 }
 0x492   : > { %v752_v59 = vpack.c.bf16 %v751_v57, %v751_v57 }
 0x494   : > { %1222 = vmatmul.mubr.msk.bf16.vlgmr.msra.gmra.mrb[4].mxu1 %vm521_vm1, %v752_v59 }
 0x567   : > { %v826_v61 = vpop.f32.mrb[4].mxu1 }
 0x568   : > { %v827_v62 = vadd.f32 %v1134_v60, %v826_v61  ;;  %v1223_v63 = vpop.f32.mrb[5].mxu1 }
 0x569   : > { %v829_v1 = vpop.f32.mrb[6].mxu1 }
 0x56a   : > { %v832_v2 = vmax.f32 %v827_v62, 0.0  ;;  %v1224_v3 = vpop.f32.mrb[7].mxu1 }
 0x56c   : > { %v833_v4 = vsel %vm521_vm1, %v832_v2, 0.0 }
 0x56d   : > { %834 = vadd.xlane.f32.xlu1 %v833_v4 }
 0x5fa   : > { %v835_v5 = vpop.xlane.xlu1 %834 }
 0x5fb   : > { %v836_v6 = vmul.f32 0.015625, %v835_v5 }
 0x5fd   : > { %v837_v7 = vsub.f32 %v832_v2, %v836_v6 }
 0x5ff   : > { %v838_v8 = vmul.f32 %v837_v7, %v837_v7 }
 0x601   : > { %v839_v9 = vsel %vm521_vm1, %v838_v8, 0.0 }
 0x602   : > { %840 = vadd.xlane.f32.xlu1 %v839_v9 }
 0x68f   : > { %v841_v14 = vpop.xlane.xlu1 %840 }
 0x690   : > { %v842_v15 = vmul.f32 0.015625, %v841_v14 }
 0x692   : > { %v843_v16 = vadd.f32 1e-05, %v842_v15 }
 0x694   : > { %1345 = vrsqrt.f32 %v843_v16 }
 0x69e   : > { %v1346_v17 = vpop.eup %1345 }
 0x69f   : > { %v845_v19 = vmul.f32 %v1346_v17, %v837_v7 }
 0x6a1   : > { %v850_v20 = vmul.f32 %v1140_v18, %v845_v19 }
 0x6a3   : > { %v855_v21 = vadd.f32 %v1141_v0, %v850_v20 }
 0x6a5   : > { %v857_v22 = vpack.c.bf16 %v855_v21, %v855_v21 }
 0x6a7   : > { %1234 = vmatmul.mubr.msk.bf16.vlgmr.msra.gmra.mrb[8].mxu0 %vm521_vm1, %v857_v22 }
 0x77a   : > { %v933_v27 = vpop.f32.mrb[8].mxu0 }
 0x77b   : > { %v934_v29 = vadd.f32 %v1142_v26, %v933_v27  ;;  %v1235_v30 = vpop.f32.mrb[9].mxu0 }
 0x77c   : > { %v936_v31 = vpop.f32.mrb[10].mxu0 }
 0x77d   : > { %v946_v32 = vadd.f32 %v945_v28, %v934_v29  ;;  %v1236_v33 = vpop.f32.mrb[11].mxu0 }
 0x77f   : > { %948 = vst.msk [vmem:[%s467_s11] sm:$0xff] %vm947_vm3, %v946_v32 }
 0x780   : > { %1504 = shalt.err (!%p1501_p13)
}
 0x781   : > { %s1505_s4 = scalar_lea.hbm %s1991_s19, 128  ;;  %s1509_s5 = scalar_lea.hbm %s2078_s24, 256 }
 0x782   : > { %p1506_p5 = scmp.ne.s32.totalorder %s1991_s19, %s1505_s4  ;;  %p1510_p3 = scmp.lt.u32.totalorder %s1991_s19, %s2078_s24 }
 0x783   : > { %p1511_p7 = scmp.lt.u32.totalorder %s1509_s5, %s1505_s4  ;;  %p1513_p1 = scmp.lt.u32.totalorder %s1505_s4, %s1991_s19 }
 0x784   : > { %p1507_p11 = pnand %p1506_p5, %p2079_p2 }
 0x785   : > { %p1512_p12 = por %p1511_p7, %p1510_p3 }
 0x786   : > { %p1508_p9 = pneg %p1507_p11 }
 0x787   : > { %p1514_p4 = por %p1513_p1, %p1512_p12 }
 0x789   : > { %p1515_p0 = pnand %p1514_p4, %p1508_p9 }
 0x78b   : > { %1518 = shalt.err (!%p1515_p0)
}
 0x78c   : > { %1253 = dma.vmem_to_hbm [thread:$0]  (%p2079_p2), %s1993_s21, 128, %s1991_s19, %s950_s17  }
 0x78d PF: > { %s2080_s29 = sld [smem:[#allocation17_spill]]  ;;  %s2081_s10 = sld [smem:[#allocation18_spill]] }
 0x78e   : > { %p2083_p6 = scmp.ge.s32.totalorder %s1569_s16, 2 }
 0x793   : > { %s975_s11 = sand.u32 1, %s2080_s29   ;;  %p2082_p8 = scmp.ne.s32.totalorder %s2081_s10, 0 }
 0x794   : > { %s976_s27 = scalar_lea.sflag [#allocation4], %s975_s11 }
 0x795   : > { %p1273_p10 = pnand %p2083_p6, %p2082_p8 }
 0x797   : > { %1552 = dma.done.wait (!%p1273_p10), %s976_s27, 128  }
 0x798   : > { %1554 = vsyncadd (!%p1273_p10), %s976_s27, 4294967168  ;;  %s2084_s23 = smov %s1786_s13  ;;  %p27_p13 = scmp.ge.s32.totalorder %s1776_s22, 4  }
 0x799   : > { %s2085_s13 = smov %s1561_s14  ;;  %s2086_s14 = smov %s1565_s15 }
 0x79a   : > { %s2087_s15 = smov %s2084_s23  ;;  %s2088_s16 = smov %s1776_s22 }
 0x79b   :  { %29 = sbr.rel (!%p27_p13) target bundleno = 14 (0xe), region = 133 }
 0x7a2   :  { %981 = vsyncpa [#allocation3], 1 }
 0x7a3   :  { %983 = vsyncpa [#allocation3 + $0x1], 1 }
 0x7a4   :  { %984 = vsyncpa [#allocation6], 1 }
 0x7a5   :  { %986 = vsyncpa [#allocation6 + $0x1], 1 }
 0x7a6   :  { %987 = vsyncpa [#allocation9], 1 }
 0x7a7   :  { %988 = vsyncpa [#allocation4], 1 }
 0x7a8   :  { %990 = vsyncpa [#allocation4 + $0x1], 1 }

</bundles_post_ra>
